<compile_context>
chip_gen: v7x
topology: tpu7x:2x2x1
jax: 0.10.0
libtpu: 0.0.40
codegen_flags: <defaults>
</compile_context>

<pallas_src>
import functools

import jax
import jax.numpy as jnp
from jax import lax
from jax.experimental import pallas as pl
from jax.experimental.pallas import tpu as pltpu


def _round_up(x, m):
    return (x + m - 1) // m * m


# ---------------------------------------------------------------------------
# Pass 1: projectors + normalize + 1/T fold + diagonal, per row block.
# ---------------------------------------------------------------------------
def _make_project_kernel(inv_t, n_valid):
    def kernel(fc_ref, fg_ref,
               w1c_ref, b1c_ref, w2c_ref, b2c_ref,
               w1g_ref, b1g_ref, w2g_ref, b2g_ref,
               zc_ref, zg_ref, diag_ref):
        i = pl.program_id(0)
        tm = fc_ref.shape[0]

        # classic projector (f32 accumulation on the MXU)
        h_c = jnp.maximum(
            jnp.dot(fc_ref[...], w1c_ref[...], preferred_element_type=jnp.float32)
            + b1c_ref[...], 0.0)
        z_c = jnp.dot(h_c, w2c_ref[...], preferred_element_type=jnp.float32) + b2c_ref[...]

        # graph projector
        h_g = jnp.maximum(
            jnp.dot(fg_ref[...], w1g_ref[...], preferred_element_type=jnp.float32)
            + b1g_ref[...], 0.0)
        z_g = jnp.dot(h_g, w2g_ref[...], preferred_element_type=jnp.float32) + b2g_ref[...]

        # F.normalize(dim=1): x / max(||x||, 1e-12) == x * rsqrt(max(sumsq, 1e-24))
        eps2 = 1e-24
        z_c = z_c * (lax.rsqrt(jnp.maximum(jnp.sum(z_c * z_c, axis=1, keepdims=True), eps2))
                     * inv_t)  # fold 1/temperature into z_classic once
        z_g = z_g * lax.rsqrt(jnp.maximum(jnp.sum(z_g * z_g, axis=1, keepdims=True), eps2))

        # mask rows that are batch padding (so pass 2 sees exact zeros)
        row = i * tm + lax.broadcasted_iota(jnp.int32, (tm, 1), 0)
        valid = (row < n_valid).astype(jnp.float32)
        z_c = z_c * valid
        z_g = z_g * valid

        # diagonal sim[i,i] (already scaled by 1/T) in full f32 precision
        diag_ref[...] = jnp.sum(z_c * z_g, axis=1, keepdims=True)
        zc_ref[...] = z_c.astype(zc_ref.dtype)
        zg_ref[...] = z_g.astype(zg_ref.dtype)

    return kernel


# ---------------------------------------------------------------------------
# Pass 2: streamed similarity blocks with online row/column exp-sum
# accumulation and symmetric cross-entropy finalize.
# ---------------------------------------------------------------------------
def _make_loss_kernel(inv_t, n_valid):
    m = inv_t  # analytic max: |sim| <= 1/T for unit-norm embeddings

    def kernel(zc_ref, zg_ref, diag_ref, loss_ref,
               row_es, col_es, acc_lse, acc_diag):
        i = pl.program_id(0)
        j = pl.program_id(1)
        ni = pl.num_programs(0)
        nj = pl.num_programs(1)
        tm = zc_ref.shape[0]
        tn = zg_ref.shape[0]

        @pl.when(jnp.logical_and(i == 0, j == 0))
        def _():
            acc_lse[...] = jnp.zeros_like(acc_lse)
            acc_diag[...] = jnp.zeros_like(acc_diag)
            col_es[...] = jnp.zeros_like(col_es)

        @pl.when(j == 0)
        def _():
            row_es[...] = jnp.zeros_like(row_es)
            acc_diag[...] += jnp.sum(diag_ref[...], keepdims=True)

        rows = i * tm + lax.broadcasted_iota(jnp.int32, (tm, 1), 0)
        cols = j * tn + lax.broadcasted_iota(jnp.int32, (1, tn), 1)
        row_valid = rows < n_valid
        col_valid = cols < n_valid

        # bf16 x bf16 -> f32 MXU matmul; z_c already carries the 1/T factor.
        sim = lax.dot_general(
            zc_ref[...], zg_ref[...],
            dimension_numbers=(((1,), (1,)), ((), ())),
            preferred_element_type=jnp.float32)  # [tm, tn]

        e = jnp.where(jnp.logical_and(row_valid, col_valid), jnp.exp(sim - m), 0.0)

        # online accumulation of the two softmax denominators
        row_es[...] += jnp.sum(e, axis=1, keepdims=True)
        cur = col_es[j]
        col_es[j] = cur + jnp.sum(e, axis=0, keepdims=True).reshape(cur.shape)

        @pl.when(j == nj - 1)
        def _():
            lse_rows = m + jnp.log(row_es[...])              # padded rows -> -inf, masked
            acc_lse[...] += jnp.sum(jnp.where(row_valid, lse_rows, 0.0), keepdims=True)

        @pl.when(jnp.logical_and(i == ni - 1, j == nj - 1))
        def _():
            tn_full = col_es.shape[2]
            blk = lax.broadcasted_iota(jnp.int32, col_es.shape, 0)
            lane = lax.broadcasted_iota(jnp.int32, col_es.shape, 2)
            cvalid = blk * tn_full + lane < n_valid
            col_lse = m + jnp.log(col_es[...])
            sum_col = jnp.sum(jnp.where(cvalid, col_lse, 0.0))
            loss = (acc_lse[0, 0] + sum_col - 2.0 * acc_diag[0, 0]) * (0.5 / n_valid)
            loss_ref[0, 0] = loss

    return kernel


# ---------------------------------------------------------------------------
# Wrapper
# ---------------------------------------------------------------------------
@functools.partial(jax.jit, static_argnames=("temperature", "tile"))
def contrastive_loss_pallas(f_classic, f_graph, params, temperature=0.1, tile=None):
    """Returns the scalar contrastive loss as a device array (no host sync)."""
    n, cd = f_classic.shape
    gd = f_graph.shape[1]
    p = params["w2c"].shape[0]

    if tile is None:
        tile = min(256, _round_up(n, 16))
    tile = _round_up(int(tile), 16)
    n_pad = _round_up(n, tile)
    nblk = n_pad // tile
    inv_t = 1.0 / float(temperature)

    fc = f_classic.astype(jnp.float32)
    fg = f_graph.astype(jnp.float32)
    if n_pad != n:
        fc = jnp.pad(fc, ((0, n_pad - n), (0, 0)))
        fg = jnp.pad(fg, ((0, n_pad - n), (0, 0)))

    row_map = lambda i: (i, 0)
    const_map = lambda i: (0, 0)

    proj_cost = pl.CostEstimate(
        flops=int(2 * n_pad * (cd * p + gd * p + 2 * p * p)),
        transcendentals=int(2 * n_pad),
        bytes_accessed=int(4 * n_pad * (cd + gd) + 4 * p * (cd + gd + 2 * p + 4)
                           + 2 * 2 * n_pad * p + 4 * n_pad))

    zc, zg, diag = pl.pallas_call(
        _make_project_kernel(inv_t, n),
        grid=(nblk,),
        in_specs=[pl.BlockSpec((tile, cd), row_map),
                  pl.BlockSpec((tile, gd), row_map),
                  pl.BlockSpec((cd, p), const_map), pl.BlockSpec((1, p), const_map),
                  pl.BlockSpec((p, p), const_map), pl.BlockSpec((1, p), const_map),
                  pl.BlockSpec((gd, p), const_map), pl.BlockSpec((1, p), const_map),
                  pl.BlockSpec((p, p), const_map), pl.BlockSpec((1, p), const_map)],
        out_specs=[pl.BlockSpec((tile, p), row_map),
                   pl.BlockSpec((tile, p), row_map),
                   pl.BlockSpec((tile, 1), row_map)],
        out_shape=[jax.ShapeDtypeStruct((n_pad, p), jnp.bfloat16),
                   jax.ShapeDtypeStruct((n_pad, p), jnp.bfloat16),
                   jax.ShapeDtypeStruct((n_pad, 1), jnp.float32)],
        compiler_params=pltpu.CompilerParams(dimension_semantics=("parallel",)),
        cost_estimate=proj_cost,
    )(fc, fg,
      params["w1c"], params["b1c"], params["w2c"], params["b2c"],
      params["w1g"], params["b1g"], params["w2g"], params["b2g"])

    sim_cost = pl.CostEstimate(
        flops=int(2 * n_pad * n_pad * p),
        transcendentals=int(n_pad * n_pad + 2 * n_pad),
        bytes_accessed=int(nblk * nblk * 2 * (tile * p * 2) + nblk * tile * 4 + 4))

    loss = pl.pallas_call(
        _make_loss_kernel(inv_t, n),
        grid=(nblk, nblk),
        in_specs=[pl.BlockSpec((tile, p), lambda i, j: (i, 0)),
                  pl.BlockSpec((tile, p), lambda i, j: (j, 0)),
                  pl.BlockSpec((tile, 1), lambda i, j: (i, 0))],
        out_specs=pl.BlockSpec(memory_space=pltpu.MemorySpace.SMEM),
        out_shape=jax.ShapeDtypeStruct((1, 1), jnp.float32),
        scratch_shapes=[pltpu.VMEM((tile, 1), jnp.float32),        # row exp-sums (current row block)
                        pltpu.VMEM((nblk, 1, tile), jnp.float32),  # column exp-sums (whole matrix)
                        pltpu.VMEM((1, 1), jnp.float32),           # sum of row-direction lse
                        pltpu.VMEM((1, 1), jnp.float32)],          # sum of diag
        compiler_params=pltpu.CompilerParams(
            dimension_semantics=("arbitrary", "arbitrary")),
        cost_estimate=sim_cost,
    )(zc, zg, diag)

    return loss[0, 0]


# ---------------------------------------------------------------------------
# Params / reference
# ---------------------------------------------------------------------------
def init_params(key, classic_dim, graph_dim, projection_dim=64):
    """Deterministic PyTorch-style (uniform +-1/sqrt(fan_in)) init.
    Weights are stored transposed relative to nn.Linear: [in, out]."""
    ks = jax.random.split(key, 8)

    def lin(kw, kb, fan_in, fan_out):
        bound = 1.0 / (fan_in ** 0.5)
        w = jax.random.uniform(kw, (fan_in, fan_out), jnp.float32, -bound, bound)
        b = jax.random.uniform(kb, (1, fan_out), jnp.float32, -bound, bound)
        return w, b

    w1c, b1c = lin(ks[0], ks[1], classic_dim, projection_dim)
    w2c, b2c = lin(ks[2], ks[3], projection_dim, projection_dim)
    w1g, b1g = lin(ks[4], ks[5], graph_dim, projection_dim)
    w2g, b2g = lin(ks[6], ks[7], projection_dim, projection_dim)
    return dict(w1c=w1c, b1c=b1c, w2c=w2c, b2c=b2c,
                w1g=w1g, b1g=b1g, w2g=w2g, b2g=b2g)


def reference_loss(f_classic, f_graph, params, temperature=0.1):
    """Pure-JAX f32 reference for sanity checking."""
    z_c = jnp.maximum(f_classic @ params["w1c"] + params["b1c"], 0.0) @ params["w2c"] + params["b2c"]
    z_g = jnp.maximum(f_graph @ params["w1g"] + params["b1g"], 0.0) @ params["w2g"] + params["b2g"]
    z_c = z_c / jnp.maximum(jnp.linalg.norm(z_c, axis=1, keepdims=True), 1e-12)
    z_g = z_g / jnp.maximum(jnp.linalg.norm(z_g, axis=1, keepdims=True), 1e-12)
    sim = z_c @ z_g.T / temperature
    n = sim.shape[0]
    labels = jnp.arange(n)
    lc = jnp.mean(jax.nn.logsumexp(sim, axis=1) - sim[labels, labels])
    lg = jnp.mean(jax.nn.logsumexp(sim.T, axis=1) - sim[labels, labels])
    return 0.5 * (lc + lg)


if __name__ == "__main__":
    temperature = 0.1
    classic_dim, graph_dim, proj_dim = 32, 16, 64

    key = jax.random.PRNGKey(0)
    k_fc, k_fg, k_p = jax.random.split(key, 3)
    params = init_params(k_p, classic_dim, graph_dim, proj_dim)

    # Case 1: multi-block grid with batch padding (N=40 -> padded to 48, 3x3 tiles of 16).
    N = 40
    f_classic = jax.random.normal(k_fc, (N, classic_dim), jnp.float32)
    f_graph = jax.random.normal(k_fg, (N, graph_dim), jnp.float32)
    loss = contrastive_loss_pallas(f_classic, f_graph, params,
                                   temperature=temperature, tile=16)
    jax.block_until_ready(loss)
    ref = float(reference_loss(f_classic, f_graph, params, temperature))
    lf = float(loss)  # .item()-equivalent host read only in the harness
    assert abs(lf - ref) < 3e-2 * max(1.0, abs(ref)), f"mismatch: pallas={lf} ref={ref}"

    # Case 2: default single-tile path at a tiny batch.
    N2 = 8
    f_classic2 = jax.random.normal(jax.random.fold_in(key, 1), (N2, classic_dim), jnp.float32)
    f_graph2 = jax.random.normal(jax.random.fold_in(key, 2), (N2, graph_dim), jnp.float32)
    loss2 = contrastive_loss_pallas(f_classic2, f_graph2, params, temperature=temperature)
    jax.block_until_ready(loss2)
    ref2 = float(reference_loss(f_classic2, f_graph2, params, temperature))
    lf2 = float(loss2)
    assert abs(lf2 - ref2) < 3e-2 * max(1.0, abs(ref2)), f"mismatch: pallas={lf2} ref={ref2}"

    print("KERNEL_OK")
</pallas_src>

<mosaic_0001>
module attributes {stable_mosaic.version = 11 : i64} {
  func.func @kernel(%arg0: i32, %arg1: memref<16x32xf32, #tpu.memory_space<vmem>>, %arg2: memref<16x16xf32, #tpu.memory_space<vmem>>, %arg3: memref<32x64xf32, #tpu.memory_space<vmem>>, %arg4: memref<1x64xf32, #tpu.memory_space<vmem>>, %arg5: memref<64x64xf32, #tpu.memory_space<vmem>>, %arg6: memref<1x64xf32, #tpu.memory_space<vmem>>, %arg7: memref<16x64xf32, #tpu.memory_space<vmem>>, %arg8: memref<1x64xf32, #tpu.memory_space<vmem>>, %arg9: memref<64x64xf32, #tpu.memory_space<vmem>>, %arg10: memref<1x64xf32, #tpu.memory_space<vmem>>, %arg11: memref<16x64xbf16, #tpu.memory_space<vmem>>, %arg12: memref<16x64xbf16, #tpu.memory_space<vmem>>, %arg13: memref<16x1xf32, #tpu.memory_space<vmem>>) attributes {dimension_semantics = [#tpu.dimension_semantics<parallel>], iteration_bounds = array<i64: 3>, scalar_prefetch = 0 : i64, scratch_operands = 0 : i64, tpu.core_type = #tpu.core_type<tc>, window_params = [{transform_indices = @transform_0, window_bounds = array<i64: 16, 32>}, {transform_indices = @transform_1, window_bounds = array<i64: 16, 16>}, {pipeline_mode = #tpu.pipeline_mode<synchronous>, transform_indices = @transform_2, window_bounds = array<i64: 32, 64>}, {pipeline_mode = #tpu.pipeline_mode<synchronous>, transform_indices = @transform_3, window_bounds = array<i64: 1, 64>}, {pipeline_mode = #tpu.pipeline_mode<synchronous>, transform_indices = @transform_4, window_bounds = array<i64: 64, 64>}, {pipeline_mode = #tpu.pipeline_mode<synchronous>, transform_indices = @transform_5, window_bounds = array<i64: 1, 64>}, {pipeline_mode = #tpu.pipeline_mode<synchronous>, transform_indices = @transform_6, window_bounds = array<i64: 16, 64>}, {pipeline_mode = #tpu.pipeline_mode<synchronous>, transform_indices = @transform_7, window_bounds = array<i64: 1, 64>}, {pipeline_mode = #tpu.pipeline_mode<synchronous>, transform_indices = @transform_8, window_bounds = array<i64: 64, 64>}, {pipeline_mode = #tpu.pipeline_mode<synchronous>, transform_indices = @transform_9, window_bounds = array<i64: 1, 64>}, {transform_indices = @transform_10, window_bounds = array<i64: 16, 64>}, {transform_indices = @transform_11, window_bounds = array<i64: 16, 64>}, {transform_indices = @transform_12, window_bounds = array<i64: 16, 1>}]} {
    %c0 = arith.constant 0 : index
    %c0_0 = arith.constant 0 : index
    %0 = vector.load %arg1[%c0, %c0_0] : memref<16x32xf32, #tpu.memory_space<vmem>>, vector<16x32xf32>
    %c0_1 = arith.constant 0 : index
    %c0_2 = arith.constant 0 : index
    %1 = vector.load %arg3[%c0_1, %c0_2] : memref<32x64xf32, #tpu.memory_space<vmem>>, vector<32x64xf32>
    %cst = arith.constant dense<0.000000e+00> : vector<16x64xf32>
    %2 = tpu.matmul %0, %1, %cst {dimension_numbers = #tpu.dot_dimension_numbers<[1], [0], [0], [1], [0, 0, 1, 1], [], []>} : vector<16x32xf32>, vector<32x64xf32>, vector<16x64xf32> -> vector<16x64xf32>
    %c0_3 = arith.constant 0 : index
    %c0_4 = arith.constant 0 : index
    %3 = vector.load %arg4[%c0_3, %c0_4] : memref<1x64xf32, #tpu.memory_space<vmem>>, vector<1x64xf32>
    %4 = vector.broadcast %3 : vector<1x64xf32> to vector<16x64xf32>
    %5 = arith.addf %2, %4 : vector<16x64xf32>
    %cst_5 = arith.constant 0.000000e+00 : f32
    %6 = vector.broadcast %cst_5 : f32 to vector<16x64xf32>
    %7 = arith.maximumf %5, %6 : vector<16x64xf32>
    %c0_6 = arith.constant 0 : index
    %c0_7 = arith.constant 0 : index
    %8 = vector.load %arg5[%c0_6, %c0_7] : memref<64x64xf32, #tpu.memory_space<vmem>>, vector<64x64xf32>
    %cst_8 = arith.constant dense<0.000000e+00> : vector<16x64xf32>
    %9 = tpu.matmul %7, %8, %cst_8 {dimension_numbers = #tpu.dot_dimension_numbers<[1], [0], [0], [1], [0, 0, 1, 1], [], []>} : vector<16x64xf32>, vector<64x64xf32>, vector<16x64xf32> -> vector<16x64xf32>
    %c0_9 = arith.constant 0 : index
    %c0_10 = arith.constant 0 : index
    %10 = vector.load %arg6[%c0_9, %c0_10] : memref<1x64xf32, #tpu.memory_space<vmem>>, vector<1x64xf32>
    %11 = vector.broadcast %10 : vector<1x64xf32> to vector<16x64xf32>
    %12 = arith.addf %9, %11 : vector<16x64xf32>
    %c0_11 = arith.constant 0 : index
    %c0_12 = arith.constant 0 : index
    %13 = vector.load %arg2[%c0_11, %c0_12] : memref<16x16xf32, #tpu.memory_space<vmem>>, vector<16x16xf32>
    %c0_13 = arith.constant 0 : index
    %c0_14 = arith.constant 0 : index
    %14 = vector.load %arg7[%c0_13, %c0_14] : memref<16x64xf32, #tpu.memory_space<vmem>>, vector<16x64xf32>
    %cst_15 = arith.constant dense<0.000000e+00> : vector<16x64xf32>
    %15 = tpu.matmul %13, %14, %cst_15 {dimension_numbers = #tpu.dot_dimension_numbers<[1], [0], [0], [1], [0, 0, 1, 1], [], []>} : vector<16x16xf32>, vector<16x64xf32>, vector<16x64xf32> -> vector<16x64xf32>
    %c0_16 = arith.constant 0 : index
    %c0_17 = arith.constant 0 : index
    %16 = vector.load %arg8[%c0_16, %c0_17] : memref<1x64xf32, #tpu.memory_space<vmem>>, vector<1x64xf32>
    %17 = vector.broadcast %16 : vector<1x64xf32> to vector<16x64xf32>
    %18 = arith.addf %15, %17 : vector<16x64xf32>
    %cst_18 = arith.constant 0.000000e+00 : f32
    %19 = vector.broadcast %cst_18 : f32 to vector<16x64xf32>
    %20 = arith.maximumf %18, %19 : vector<16x64xf32>
    %c0_19 = arith.constant 0 : index
    %c0_20 = arith.constant 0 : index
    %21 = vector.load %arg9[%c0_19, %c0_20] : memref<64x64xf32, #tpu.memory_space<vmem>>, vector<64x64xf32>
    %cst_21 = arith.constant dense<0.000000e+00> : vector<16x64xf32>
    %22 = tpu.matmul %20, %21, %cst_21 {dimension_numbers = #tpu.dot_dimension_numbers<[1], [0], [0], [1], [0, 0, 1, 1], [], []>} : vector<16x64xf32>, vector<64x64xf32>, vector<16x64xf32> -> vector<16x64xf32>
    %c0_22 = arith.constant 0 : index
    %c0_23 = arith.constant 0 : index
    %23 = vector.load %arg10[%c0_22, %c0_23] : memref<1x64xf32, #tpu.memory_space<vmem>>, vector<1x64xf32>
    %24 = vector.broadcast %23 : vector<1x64xf32> to vector<16x64xf32>
    %25 = arith.addf %22, %24 : vector<16x64xf32>
    %26 = arith.mulf %12, %12 : vector<16x64xf32>
    %cst_24 = arith.constant dense<0.000000e+00> : vector<16xf32>
    %27 = vector.multi_reduction <add>, %26, %cst_24 [1] : vector<16x64xf32> to vector<16xf32>
    %28 = vector.shape_cast %27 : vector<16xf32> to vector<16x1xf32>
    %cst_25 = arith.constant 1.000000e-24 : f32
    %29 = vector.broadcast %cst_25 : f32 to vector<16x1xf32>
    %30 = arith.maximumf %28, %29 : vector<16x1xf32>
    %31 = math.rsqrt %30 : vector<16x1xf32>
    %cst_26 = arith.constant 1.000000e+01 : f32
    %32 = vector.broadcast %cst_26 : f32 to vector<16x1xf32>
    %33 = arith.mulf %31, %32 : vector<16x1xf32>
    %34 = vector.broadcast %33 : vector<16x1xf32> to vector<16x64xf32>
    %35 = arith.mulf %12, %34 : vector<16x64xf32>
    %36 = arith.mulf %25, %25 : vector<16x64xf32>
    %cst_27 = arith.constant dense<0.000000e+00> : vector<16xf32>
    %37 = vector.multi_reduction <add>, %36, %cst_27 [1] : vector<16x64xf32> to vector<16xf32>
    %38 = vector.shape_cast %37 : vector<16xf32> to vector<16x1xf32>
    %cst_28 = arith.constant 1.000000e-24 : f32
    %39 = vector.broadcast %cst_28 : f32 to vector<16x1xf32>
    %40 = arith.maximumf %38, %39 : vector<16x1xf32>
    %41 = math.rsqrt %40 : vector<16x1xf32>
    %42 = vector.broadcast %41 : vector<16x1xf32> to vector<16x64xf32>
    %43 = arith.mulf %25, %42 : vector<16x64xf32>
    %c16_i32 = arith.constant 16 : i32
    %44 = arith.muli %arg0, %c16_i32 : i32
    %45 = tpu.iota {dimensions = array<i32: 0>} : vector<16x1xi32>
    %46 = vector.broadcast %44 : i32 to vector<16x1xi32>
    %47 = arith.addi %46, %45 : vector<16x1xi32>
    %c40_i32 = arith.constant 40 : i32
    %48 = vector.broadcast %c40_i32 : i32 to vector<16x1xi32>
    %49 = arith.cmpi slt, %47, %48 : vector<16x1xi32>
    %50 = arith.extui %49 : vector<16x1xi1> to vector<16x1xi32>
    %51 = arith.sitofp %50 : vector<16x1xi32> to vector<16x1xf32>
    %52 = vector.broadcast %51 : vector<16x1xf32> to vector<16x64xf32>
    %53 = arith.mulf %35, %52 : vector<16x64xf32>
    %54 = vector.broadcast %51 : vector<16x1xf32> to vector<16x64xf32>
    %55 = arith.mulf %43, %54 : vector<16x64xf32>
    %56 = arith.mulf %53, %55 : vector<16x64xf32>
    %cst_29 = arith.constant dense<0.000000e+00> : vector<16xf32>
    %57 = vector.multi_reduction <add>, %56, %cst_29 [1] : vector<16x64xf32> to vector<16xf32>
    %58 = vector.shape_cast %57 : vector<16xf32> to vector<16x1xf32>
    %c0_30 = arith.constant 0 : index
    %c0_31 = arith.constant 0 : index
    %59 = vector.load %arg13[%c0_30, %c0_31] : memref<16x1xf32, #tpu.memory_space<vmem>>, vector<16x1xf32>
    tpu.vector_store %arg13[%c0_30, %c0_31], %58 {strides = array<i32>} : memref<16x1xf32, #tpu.memory_space<vmem>>, vector<16x1xf32>,
    %60 = arith.truncf %53 : vector<16x64xf32> to vector<16x64xbf16>
    %c0_32 = arith.constant 0 : index
    %c0_33 = arith.constant 0 : index
    %61 = vector.load %arg11[%c0_32, %c0_33] : memref<16x64xbf16, #tpu.memory_space<vmem>>, vector<16x64xbf16>
    tpu.vector_store %arg11[%c0_32, %c0_33], %60 {strides = array<i32>} : memref<16x64xbf16, #tpu.memory_space<vmem>>, vector<16x64xbf16>,
    %62 = arith.truncf %55 : vector<16x64xf32> to vector<16x64xbf16>
    %c0_34 = arith.constant 0 : index
    %c0_35 = arith.constant 0 : index
    %63 = vector.load %arg12[%c0_34, %c0_35] : memref<16x64xbf16, #tpu.memory_space<vmem>>, vector<16x64xbf16>
    tpu.vector_store %arg12[%c0_34, %c0_35], %62 {strides = array<i32>} : memref<16x64xbf16, #tpu.memory_space<vmem>>, vector<16x64xbf16>,
    return
  }
  func.func @transform_0(%arg0: i32) -> (i32, i32) {
    %c0_i32 = arith.constant 0 : i32
    %c0_i32_0 = arith.constant 0 : i32
    return %arg0, %c0_i32 : i32, i32
  }
  func.func @transform_1(%arg0: i32) -> (i32, i32) {
    %c0_i32 = arith.constant 0 : i32
    %c0_i32_0 = arith.constant 0 : i32
    return %arg0, %c0_i32 : i32, i32
  }
  func.func @transform_2(%arg0: i32) -> (i32, i32) {
    %c0_i32 = arith.constant 0 : i32
    %c0_i32_0 = arith.constant 0 : i32
    %c0_i32_1 = arith.constant 0 : i32
    return %c0_i32, %c0_i32_0 : i32, i32
  }
  func.func @transform_3(%arg0: i32) -> (i32, i32) {
    %c0_i32 = arith.constant 0 : i32
    %c0_i32_0 = arith.constant 0 : i32
    %c0_i32_1 = arith.constant 0 : i32
    return %c0_i32, %c0_i32_0 : i32, i32
  }
  func.func @transform_4(%arg0: i32) -> (i32, i32) {
    %c0_i32 = arith.constant 0 : i32
    %c0_i32_0 = arith.constant 0 : i32
    %c0_i32_1 = arith.constant 0 : i32
    return %c0_i32, %c0_i32_0 : i32, i32
  }
  func.func @transform_5(%arg0: i32) -> (i32, i32) {
    %c0_i32 = arith.constant 0 : i32
    %c0_i32_0 = arith.constant 0 : i32
    %c0_i32_1 = arith.constant 0 : i32
    return %c0_i32, %c0_i32_0 : i32, i32
  }
  func.func @transform_6(%arg0: i32) -> (i32, i32) {
    %c0_i32 = arith.constant 0 : i32
    %c0_i32_0 = arith.constant 0 : i32
    %c0_i32_1 = arith.constant 0 : i32
    return %c0_i32, %c0_i32_0 : i32, i32
  }
  func.func @transform_7(%arg0: i32) -> (i32, i32) {
    %c0_i32 = arith.constant 0 : i32
    %c0_i32_0 = arith.constant 0 : i32
    %c0_i32_1 = arith.constant 0 : i32
    return %c0_i32, %c0_i32_0 : i32, i32
  }
  func.func @transform_8(%arg0: i32) -> (i32, i32) {
    %c0_i32 = arith.constant 0 : i32
    %c0_i32_0 = arith.constant 0 : i32
    %c0_i32_1 = arith.constant 0 : i32
    return %c0_i32, %c0_i32_0 : i32, i32
  }
  func.func @transform_9(%arg0: i32) -> (i32, i32) {
    %c0_i32 = arith.constant 0 : i32
    %c0_i32_0 = arith.constant 0 : i32
    %c0_i32_1 = arith.constant 0 : i32
    return %c0_i32, %c0_i32_0 : i32, i32
  }
  func.func @transform_10(%arg0: i32) -> (i32, i32) {
    %c0_i32 = arith.constant 0 : i32
    %c0_i32_0 = arith.constant 0 : i32
    return %arg0, %c0_i32 : i32, i32
  }
  func.func @transform_11(%arg0: i32) -> (i32, i32) {
    %c0_i32 = arith.constant 0 : i32
    %c0_i32_0 = arith.constant 0 : i32
    return %arg0, %c0_i32 : i32, i32
  }
  func.func @transform_12(%arg0: i32) -> (i32, i32) {
    %c0_i32 = arith.constant 0 : i32
    %c0_i32_0 = arith.constant 0 : i32
    return %arg0, %c0_i32 : i32, i32
  }
}

module attributes {stable_mosaic.version = 11 : i64} {
  func.func @kernel(%arg0: i32, %arg1: i32, %arg2: memref<16x64xbf16, #tpu.memory_space<vmem>>, %arg3: memref<16x64xbf16, #tpu.memory_space<vmem>>, %arg4: memref<16x1xf32, #tpu.memory_space<vmem>>, %arg5: memref<1x1xf32, #tpu.memory_space<smem>>, %arg6: memref<16x1xf32, #tpu.memory_space<vmem>>, %arg7: memref<3x1x16xf32, #tpu.memory_space<vmem>>, %arg8: memref<1x1xf32, #tpu.memory_space<vmem>>, %arg9: memref<1x1xf32, #tpu.memory_space<vmem>>) attributes {dimension_semantics = [#tpu.dimension_semantics<arbitrary>, #tpu.dimension_semantics<arbitrary>], iteration_bounds = array<i64: 3, 3>, scalar_prefetch = 0 : i64, scratch_operands = 4 : i64, tpu.core_type = #tpu.core_type<tc>, window_params = [{transform_indices = @transform_0, window_bounds = array<i64: 16, 64>}, {transform_indices = @transform_1, window_bounds = array<i64: 16, 64>}, {transform_indices = @transform_2, window_bounds = array<i64: 16, 1>}, {transform_indices = @transform_3, window_bounds = array<i64: 1, 1>}]} {
    %c0_i32 = arith.constant 0 : i32
    %0 = arith.cmpi eq, %arg0, %c0_i32 : i32
    %c0_i32_0 = arith.constant 0 : i32
    %1 = arith.cmpi eq, %arg1, %c0_i32_0 : i32
    %2 = arith.andi %0, %1 : i1
    %3 = arith.extui %2 : i1 to i32
    %c0_i32_1 = arith.constant 0 : i32
    %4 = arith.cmpi ne, %3, %c0_i32_1 : i32
    scf.if %4 {
      %cst_25 = arith.constant 0.000000e+00 : f32
      %54 = vector.broadcast %cst_25 : f32 to vector<1x1xf32>
      %c0_26 = arith.constant 0 : index
      %c0_27 = arith.constant 0 : index
      %55 = vector.load %arg8[%c0_26, %c0_27] : memref<1x1xf32, #tpu.memory_space<vmem>>, vector<1x1xf32>
      tpu.vector_store %arg8[%c0_26, %c0_27], %54 {strides = array<i32>} : memref<1x1xf32, #tpu.memory_space<vmem>>, vector<1x1xf32>,
      %cst_28 = arith.constant 0.000000e+00 : f32
      %56 = vector.broadcast %cst_28 : f32 to vector<1x1xf32>
      %c0_29 = arith.constant 0 : index
      %c0_30 = arith.constant 0 : index
      %57 = vector.load %arg9[%c0_29, %c0_30] : memref<1x1xf32, #tpu.memory_space<vmem>>, vector<1x1xf32>
      tpu.vector_store %arg9[%c0_29, %c0_30], %56 {strides = array<i32>} : memref<1x1xf32, #tpu.memory_space<vmem>>, vector<1x1xf32>,
      %cst_31 = arith.constant 0.000000e+00 : f32
      %58 = vector.broadcast %cst_31 : f32 to vector<3x1x16xf32>
      %c0_32 = arith.constant 0 : index
      %c0_33 = arith.constant 0 : index
      %c0_34 = arith.constant 0 : index
      %59 = vector.load %arg7[%c0_32, %c0_33, %c0_34] : memref<3x1x16xf32, #tpu.memory_space<vmem>>, vector<3x1x16xf32>
      tpu.vector_store %arg7[%c0_32, %c0_33, %c0_34], %58 {strides = array<i32>} : memref<3x1x16xf32, #tpu.memory_space<vmem>>, vector<3x1x16xf32>,
    } else {
    }
    %c0_i32_2 = arith.constant 0 : i32
    %5 = arith.cmpi eq, %arg1, %c0_i32_2 : i32
    %6 = arith.extui %5 : i1 to i32
    %c0_i32_3 = arith.constant 0 : i32
    %7 = arith.cmpi ne, %6, %c0_i32_3 : i32
    scf.if %7 {
      %cst_25 = arith.constant 0.000000e+00 : f32
      %54 = vector.broadcast %cst_25 : f32 to vector<16x1xf32>
      %c0_26 = arith.constant 0 : index
      %c0_27 = arith.constant 0 : index
      %55 = vector.load %arg6[%c0_26, %c0_27] : memref<16x1xf32, #tpu.memory_space<vmem>>, vector<16x1xf32>
      tpu.vector_store %arg6[%c0_26, %c0_27], %54 {strides = array<i32>} : memref<16x1xf32, #tpu.memory_space<vmem>>, vector<16x1xf32>,
      %c0_28 = arith.constant 0 : index
      %c0_29 = arith.constant 0 : index
      %56 = vector.load %arg9[%c0_28, %c0_29] : memref<1x1xf32, #tpu.memory_space<vmem>>, vector<1x1xf32>
      %c0_30 = arith.constant 0 : index
      %c0_31 = arith.constant 0 : index
      %57 = vector.load %arg4[%c0_30, %c0_31] : memref<16x1xf32, #tpu.memory_space<vmem>>, vector<16x1xf32>
      %58 = vector.shape_cast %57 : vector<16x1xf32> to vector<1x16x1xf32>
      %cst_32 = arith.constant dense<0.000000e+00> : vector<1xf32>
      %59 = vector.multi_reduction <add>, %58, %cst_32 [1, 2] : vector<1x16x1xf32> to vector<1xf32>
      %60 = vector.shape_cast %59 : vector<1xf32> to vector<1x1x1xf32>
      %61 = vector.extract %60[0, 0, 0] : f32 from vector<1x1x1xf32>
      %62 = vector.broadcast %61 : f32 to vector<1x1xf32>
      %63 = arith.addf %56, %62 : vector<1x1xf32>
      %c0_33 = arith.constant 0 : index
      %c0_34 = arith.constant 0 : index
      %64 = vector.load %arg9[%c0_33, %c0_34] : memref<1x1xf32, #tpu.memory_space<vmem>>, vector<1x1xf32>
      tpu.vector_store %arg9[%c0_33, %c0_34], %63 {strides = array<i32>} : memref<1x1xf32, #tpu.memory_space<vmem>>, vector<1x1xf32>,
    } else {
    }
    %c16_i32 = arith.constant 16 : i32
    %8 = arith.muli %arg0, %c16_i32 : i32
    %9 = tpu.iota {dimensions = array<i32: 0>} : vector<16x1xi32>
    %10 = vector.broadcast %8 : i32 to vector<16x1xi32>
    %11 = arith.addi %10, %9 : vector<16x1xi32>
    %c16_i32_4 = arith.constant 16 : i32
    %12 = arith.muli %arg1, %c16_i32_4 : i32
    %13 = tpu.iota {dimensions = array<i32: 1>} : vector<1x16xi32>
    %14 = vector.broadcast %12 : i32 to vector<1x16xi32>
    %15 = arith.addi %14, %13 : vector<1x16xi32>
    %c40_i32 = arith.constant 40 : i32
    %16 = vector.broadcast %c40_i32 : i32 to vector<16x1xi32>
    %17 = arith.cmpi slt, %11, %16 : vector<16x1xi32>
    %c40_i32_5 = arith.constant 40 : i32
    %18 = vector.broadcast %c40_i32_5 : i32 to vector<1x16xi32>
    %19 = arith.cmpi slt, %15, %18 : vector<1x16xi32>
    %c0 = arith.constant 0 : index
    %c0_6 = arith.constant 0 : index
    %20 = vector.load %arg2[%c0, %c0_6] : memref<16x64xbf16, #tpu.memory_space<vmem>>, vector<16x64xbf16>
    %c0_7 = arith.constant 0 : index
    %c0_8 = arith.constant 0 : index
    %21 = vector.load %arg3[%c0_7, %c0_8] : memref<16x64xbf16, #tpu.memory_space<vmem>>, vector<16x64xbf16>
    %cst = arith.constant dense<0.000000e+00> : vector<16x16xf32>
    %22 = tpu.matmul %20, %21, %cst {dimension_numbers = #tpu.dot_dimension_numbers<[1], [1], [0], [0], [0, 0, 1, 0], [], []>} : vector<16x64xbf16>, vector<16x64xbf16>, vector<16x16xf32> -> vector<16x16xf32>
    %23 = vector.broadcast %17 : vector<16x1xi1> to vector<16x16xi1>
    %24 = vector.broadcast %19 : vector<1x16xi1> to vector<16x16xi1>
    %25 = arith.andi %23, %24 : vector<16x16xi1>
    %cst_9 = arith.constant 1.000000e+01 : f32
    %26 = vector.broadcast %cst_9 : f32 to vector<16x16xf32>
    %27 = arith.subf %22, %26 : vector<16x16xf32>
    %28 = math.exp %27 : vector<16x16xf32>
    %cst_10 = arith.constant 0.000000e+00 : f32
    %29 = vector.broadcast %cst_10 : f32 to vector<16x16xf32>
    %30 = arith.select %25, %28, %29 : vector<16x16xi1>, vector<16x16xf32>
    %c0_11 = arith.constant 0 : index
    %c0_12 = arith.constant 0 : index
    %31 = vector.load %arg6[%c0_11, %c0_12] : memref<16x1xf32, #tpu.memory_space<vmem>>, vector<16x1xf32>
    %cst_13 = arith.constant dense<0.000000e+00> : vector<16xf32>
    %32 = vector.multi_reduction <add>, %30, %cst_13 [1] : vector<16x16xf32> to vector<16xf32>
    %33 = vector.shape_cast %32 : vector<16xf32> to vector<16x1xf32>
    %34 = arith.addf %31, %33 : vector<16x1xf32>
    %c0_14 = arith.constant 0 : index
    %c0_15 = arith.constant 0 : index
    %35 = vector.load %arg6[%c0_14, %c0_15] : memref<16x1xf32, #tpu.memory_space<vmem>>, vector<16x1xf32>
    tpu.vector_store %arg6[%c0_14, %c0_15], %34 {strides = array<i32>} : memref<16x1xf32, #tpu.memory_space<vmem>>, vector<16x1xf32>,
    %36 = arith.index_cast %arg1 : i32 to index
    %c0_16 = arith.constant 0 : index
    %c0_17 = arith.constant 0 : index
    %37 = vector.load %arg7[%36, %c0_16, %c0_17] : memref<3x1x16xf32, #tpu.memory_space<vmem>>, vector<1x1x16xf32>
    %38 = vector.shape_cast %37 : vector<1x1x16xf32> to vector<1x16xf32>
    %cst_18 = arith.constant dense<0.000000e+00> : vector<16xf32>
    %39 = vector.multi_reduction <add>, %30, %cst_18 [0] : vector<16x16xf32> to vector<16xf32>
    %40 = vector.shape_cast %39 : vector<16xf32> to vector<1x16xf32>
    %41 = arith.addf %38, %40 : vector<1x16xf32>
    %42 = arith.index_cast %arg1 : i32 to index
    %c0_19 = arith.constant 0 : index
    %c0_20 = arith.constant 0 : index
    %43 = vector.load %arg7[%42, %c0_19, %c0_20] : memref<3x1x16xf32, #tpu.memory_space<vmem>>, vector<1x1x16xf32>
    %44 = vector.shape_cast %43 : vector<1x1x16xf32> to vector<1x16xf32>
    %45 = vector.shape_cast %41 : vector<1x16xf32> to vector<1x1x16xf32>
    tpu.vector_store %arg7[%42, %c0_19, %c0_20], %45 {strides = array<i32>} : memref<3x1x16xf32, #tpu.memory_space<vmem>>, vector<1x1x16xf32>,
    %c2_i32 = arith.constant 2 : i32
    %46 = arith.cmpi eq, %arg1, %c2_i32 : i32
    %47 = arith.extui %46 : i1 to i32
    %c0_i32_21 = arith.constant 0 : i32
    %48 = arith.cmpi ne, %47, %c0_i32_21 : i32
    scf.if %48 {
      %c0_25 = arith.constant 0 : index
      %c0_26 = arith.constant 0 : index
      %54 = vector.load %arg6[%c0_25, %c0_26] : memref<16x1xf32, #tpu.memory_space<vmem>>, vector<16x1xf32>
      %55 = math.log %54 : vector<16x1xf32>
      %cst_27 = arith.constant 1.000000e+01 : f32
      %56 = vector.broadcast %cst_27 : f32 to vector<16x1xf32>
      %57 = arith.addf %56, %55 : vector<16x1xf32>
      %c0_28 = arith.constant 0 : index
      %c0_29 = arith.constant 0 : index
      %58 = vector.load %arg8[%c0_28, %c0_29] : memref<1x1xf32, #tpu.memory_space<vmem>>, vector<1x1xf32>
      %cst_30 = arith.constant 0.000000e+00 : f32
      %59 = vector.broadcast %cst_30 : f32 to vector<16x1xf32>
      %60 = arith.select %17, %57, %59 : vector<16x1xi1>, vector<16x1xf32>
      %61 = vector.shape_cast %60 : vector<16x1xf32> to vector<1x16x1xf32>
      %cst_31 = arith.constant dense<0.000000e+00> : vector<1xf32>
      %62 = vector.multi_reduction <add>, %61, %cst_31 [1, 2] : vector<1x16x1xf32> to vector<1xf32>
      %63 = vector.shape_cast %62 : vector<1xf32> to vector<1x1x1xf32>
      %64 = vector.extract %63[0, 0, 0] : f32 from vector<1x1x1xf32>
      %65 = vector.broadcast %64 : f32 to vector<1x1xf32>
      %66 = arith.addf %58, %65 : vector<1x1xf32>
      %c0_32 = arith.constant 0 : index
      %c0_33 = arith.constant 0 : index
      %67 = vector.load %arg8[%c0_32, %c0_33] : memref<1x1xf32, #tpu.memory_space<vmem>>, vector<1x1xf32>
      tpu.vector_store %arg8[%c0_32, %c0_33], %66 {strides = array<i32>} : memref<1x1xf32, #tpu.memory_space<vmem>>, vector<1x1xf32>,
    } else {
    }
    %c2_i32_22 = arith.constant 2 : i32
    %49 = arith.cmpi eq, %arg0, %c2_i32_22 : i32
    %c2_i32_23 = arith.constant 2 : i32
    %50 = arith.cmpi eq, %arg1, %c2_i32_23 : i32
    %51 = arith.andi %49, %50 : i1
    %52 = arith.extui %51 : i1 to i32
    %c0_i32_24 = arith.constant 0 : i32
    %53 = arith.cmpi ne, %52, %c0_i32_24 : i32
    scf.if %53 {
      %54 = tpu.iota {dimensions = array<i32: 0>} : vector<3x1x16xi32>
      %55 = tpu.iota {dimensions = array<i32: 2>} : vector<3x1x16xi32>
      %c16_i32_25 = arith.constant 16 : i32
      %56 = vector.broadcast %c16_i32_25 : i32 to vector<3x1x16xi32>
      %57 = arith.muli %54, %56 : vector<3x1x16xi32>
      %58 = arith.addi %57, %55 : vector<3x1x16xi32>
      %c40_i32_26 = arith.constant 40 : i32
      %59 = vector.broadcast %c40_i32_26 : i32 to vector<3x1x16xi32>
      %60 = arith.cmpi slt, %58, %59 : vector<3x1x16xi32>
      %c0_27 = arith.constant 0 : index
      %c0_28 = arith.constant 0 : index
      %c0_29 = arith.constant 0 : index
      %61 = vector.load %arg7[%c0_27, %c0_28, %c0_29] : memref<3x1x16xf32, #tpu.memory_space<vmem>>, vector<3x1x16xf32>
      %62 = math.log %61 : vector<3x1x16xf32>
      %cst_30 = arith.constant 1.000000e+01 : f32
      %63 = vector.broadcast %cst_30 : f32 to vector<3x1x16xf32>
      %64 = arith.addf %63, %62 : vector<3x1x16xf32>
      %cst_31 = arith.constant 0.000000e+00 : f32
      %65 = vector.broadcast %cst_31 : f32 to vector<3x1x16xf32>
      %66 = arith.select %60, %64, %65 : vector<3x1x16xi1>, vector<3x1x16xf32>
      %67 = vector.shape_cast %66 : vector<3x1x16xf32> to vector<1x3x1x16xf32>
      %cst_32 = arith.constant dense<0.000000e+00> : vector<1xf32>
      %68 = vector.multi_reduction <add>, %67, %cst_32 [1, 2, 3] : vector<1x3x1x16xf32> to vector<1xf32>
      %69 = vector.shape_cast %68 : vector<1xf32> to vector<1x1x1x1xf32>
      %70 = vector.extract %69[0, 0, 0, 0] : f32 from vector<1x1x1x1xf32>
      %c0_33 = arith.constant 0 : index
      %c0_34 = arith.constant 0 : index
      %71 = vector.load %arg8[%c0_33, %c0_34] : memref<1x1xf32, #tpu.memory_space<vmem>>, vector<1x1xf32>
      %72 = vector.extract %71[0, 0] : f32 from vector<1x1xf32>
      %73 = arith.addf %72, %70 : f32
      %c0_35 = arith.constant 0 : index
      %c0_36 = arith.constant 0 : index
      %74 = vector.load %arg9[%c0_35, %c0_36] : memref<1x1xf32, #tpu.memory_space<vmem>>, vector<1x1xf32>
      %75 = vector.extract %74[0, 0] : f32 from vector<1x1xf32>
      %cst_37 = arith.constant 2.000000e+00 : f32
      %76 = arith.mulf %cst_37, %75 : f32
      %77 = arith.subf %73, %76 : f32
      %cst_38 = arith.constant 1.250000e-02 : f32
      %78 = arith.mulf %77, %cst_38 : f32
      %c0_39 = arith.constant 0 : index
      %c0_40 = arith.constant 0 : index
      %79 = memref.load %arg5[%c0_39, %c0_40] : memref<1x1xf32, #tpu.memory_space<smem>>
      memref.store %78, %arg5[%c0_39, %c0_40] : memref<1x1xf32, #tpu.memory_space<smem>>
    } else {
    }
    return
  }
  func.func @transform_0(%arg0: i32, %arg1: i32) -> (i32, i32) {
    %c0_i32 = arith.constant 0 : i32
    %c0_i32_0 = arith.constant 0 : i32
    return %arg0, %c0_i32 : i32, i32
  }
  func.func @transform_1(%arg0: i32, %arg1: i32) -> (i32, i32) {
    %c0_i32 = arith.constant 0 : i32
    %c0_i32_0 = arith.constant 0 : i32
    return %arg1, %c0_i32 : i32, i32
  }
  func.func @transform_2(%arg0: i32, %arg1: i32) -> (i32, i32) {
    %c0_i32 = arith.constant 0 : i32
    %c0_i32_0 = arith.constant 0 : i32
    return %arg0, %c0_i32 : i32, i32
  }
  func.func @transform_3(%arg0: i32, %arg1: i32) -> (i32, i32) {
    %c0_i32 = arith.constant 0 : i32
    %c0_i32_0 = arith.constant 0 : i32
    %c0_i32_1 = arith.constant 0 : i32
    return %c0_i32, %c0_i32_0 : i32, i32
  }
}

</mosaic_0001>

<bundles_post_ra>
// kernel: contrastive_loss_pallas.3
= control target key start
LH: loop header
LB: loop body
LE: loop exit
PB: predicated region body
PF: predicated region fallthrough
CT: control target
= control target key end

     0   :  { %8 = vsyncpa [#allocation7], 0  ;;  %s724_s12 = smov 0   ;;  %s726_s13 = smov 0   ;;  %s834_s0 = inlined_call_operand.vmem [shape: bf16[48,64], index: 0, kind: input, shape index: {}]   ;;  %s835_s1 = inlined_call_operand.vmem [shape: bf16[48,64], index: 1, kind: input, shape index: {}]   ;;  %s836_s2 = inlined_call_operand.vmem [shape: f32[48,1], index: 2, kind: input, shape index: {}]   ;;  %s837_s3 = inlined_call_operand.hbm [shape: f32[1,1], index: 3, kind: output, shape index: {}]  }
   0x1   :  { %s728_s14 = smov 0   ;;  %s730_s15 = smov 0  }
   0x2   :  { %s732_s16 = smov 0  }
   0x3 LB: > { %s535_s17 = sadd.s32 4294967295, %s697_s16   ;;  %s23_s18 = sadd.s32 1, %s689_s14  ;;  %s697_s16 = sphi %s732_s16, %s14_s16   ;;  %s693_s15 = sphi %s730_s15, %s841_s15   ;;  %s689_s14 = sphi %s728_s14, %s840_s14   ;;  %s685_s13 = sphi %s726_s13, %s839_s13   ;;  %s681_s12 = sphi %s724_s12, %s838_s12  }
   0x4   : > { %p24_p0 = scmp.ge.s32.totalorder %s23_s18, 3  ;;  %s26_s19 = sadd.s32 1, %s693_s15 }
   0x5   : > { %p538_p1 = scmp.ge.s32.totalorder %s697_s16, 1  ;;  %p168_p2 = scmp.lt.s32.totalorder %s697_s16, 10 }
   0x6   : > { %s843_s18 = smov (%p24_p0, %s23_s18), 0  ;;  %s845_s19 = smov (!%p24_p0, %s26_s19), %s693_s15 }
   0x7   : > { %p169_p3 = pnand %p538_p1, %p168_p2  ;;  %p28_p4 = scmp.ge.s32.totalorder %s845_s19, 3 }
   0x8   : > { %s539_s20 = sshll.u32 (!%p169_p3), %s685_s13, 1  ;;  %s541_s21 = sshll.u32 (!%p169_p3), %s681_s12, 1 }
   0x9   : > { %s847_s19 = smov (%p28_p4, %s845_s19), 0  ;;  %172 = sbr.rel (%p169_p3) target bundleno = 1115 (0x45b), region = 32 }
   0xa   : > { %p198_p5 = scmp.lt.s32.totalorder (!%p169_p3), %s539_s20, 5  ;;  %p204_p6 = scmp.lt.s32.totalorder (!%p169_p3), %s541_s21, 5 }
   0xb   : > { %p216_p7 = scmp.eq.s32.totalorder (!%p169_p3), %s685_s13, 0  ;;  %p217_p8 = scmp.eq.s32.totalorder (!%p169_p3), %s681_s12, 0 }
   0xd   : > { %p218_p9 = pnand (!%p169_p3), %p217_p8, %p216_p7 }
  0x10   : > { %s849_s20 = smov (!%p198_p5, %s539_s20), 5  ;;  %s851_s21 = smov (!%p204_p6, %s541_s21), 5 }
  0x11   : > { %s540_s22 = sshll.u32 %s849_s20, 2  ;;  %s544_s23 = sshll.u32 %s849_s20, 3  ;;  %vm222_vm0 = vcmask (!%p218_p9), 0   ;;  %vm225_vm1 = vcmask (!%p218_p9), 122880   ;;  %v699_v0 = vmov (!%p218_p9), 0.0  }
  0x12   : > { %s766_s26 = scalar_lea.vmem %s834_s0, %s540_s22  ;;  %s542_s27 = sshll.u32 %s851_s21, 2  ;;  %223 = vst.msk [vmem:[#allocation4] sm:$0x1] (!%p218_p9), %vm222_vm0, %v699_v0  ;;  %224 = vst.msk [vmem:[#allocation5] sm:$0x1] (!%p218_p9), %vm222_vm0, %v699_v0 }
  0x13   : > { %s771_s30 = scalar_lea.vmem %s835_s1, %s542_s27  ;;  %s213_s6 = scalar_lea.vmem %s836_s2, %s544_s23  ;;  %226 = vst.msk [vmem:[#allocation3] sm:$0x1] (!%p218_p9), %vm225_vm1, %v699_v0  ;;  %227 = vst.msk [vmem:[#allocation3 + $0x1] sm:$0x1] (!%p218_p9), %vm225_vm1, %v699_v0 }
  0x14   : > { %221 = sbr.rel (%p218_p9) target bundleno = 27 (0x1b), region = 36  ;;  %228 = vst.msk [vmem:[#allocation3 + $0x2] sm:$0x1] (!%p218_p9), %vm225_vm1, %v699_v0 }
  0x1b PF: > { %p545_p10 = scmp.ne.s32.totalorder %s681_s12, 0 }
  0x1c   : > { %vm232_vm2 = vcmask (!%p545_p10), 7168   ;;  %v236_v1 = vld [vmem:[%s213_s6] sm:$0xff] (!%p545_p10)  ;;  %v237_v2 = vld [vmem:[%s213_s6 + $0x8] sm:$0xff] (!%p545_p10)  ;;  %v700_v3 = vmov (!%p545_p10), 0.0   ;;  %v235_v14 = vld [vmem:[#allocation5] sm:$0x1] (!%p545_p10) }
  0x1d   : > { %231 = sbr.rel (%p545_p10) target bundleno = 240 (0xf0), region = 40  ;;  %233 = vst.msk [vmem:[#allocation2] sm:$0xff] (!%p545_p10), %vm232_vm2, %v700_v3  ;;  %234 = vst.msk [vmem:[#allocation2 + $0x8] sm:$0xff] (!%p545_p10), %vm232_vm2, %v700_v3  ;;  %v238_v4 = vsel (!%p545_p10), %vm232_vm2, %v236_v1, 0.0  ;;  %v239_v5 = vsel (!%p545_p10), %vm232_vm2, %v237_v2, 0.0  ;;  %vm252_vm3 = vcmask (!%p545_p10), 0  }
  0x1e   : > { %v240_v6 = vadd.f32 (!%p545_p10), %v239_v5, %v238_v4 }
  0x20   : > { %241 = vadd.xlane.f32.xlu0 (!%p545_p10), %v240_v6 }
  0xad   : > { %v242_v7 = vpop.xlane.xlu0 %241 }
  0xae   : > { %v243_v8 = vrot.slane %v242_v7, 4 }
  0xb0   : > { %v244_v9 = vadd.f32 %v243_v8, %v242_v7 }
  0xb2   : > { %v245_v10 = vrot.slane %v244_v9, 2 }
  0xb4   : > { %v246_v11 = vadd.f32 %v245_v10, %v244_v9 }
  0xb6   : > { %v247_v12 = vrot.slane %v246_v11, 1 }
  0xb8   : > { %v248_v13 = vadd.f32 %v247_v12, %v246_v11 }
  0xba   : > { %566 = vpush %v248_v13 }
  0xeb   : > { %s567_s7 = spop %566 }
  0xec   : > { %v250_v15 = vstv %s567_s7 }
  0xed   : > { %v251_v16 = vadd.f32 %v250_v15, %v235_v14 }
  0xef   : > { %253 = vst.msk [vmem:[#allocation5] sm:$0x1] %vm252_vm3, %v251_v16 }
  0xf0 PF: > { %v627_v17 = vld [vmem:[%s771_s30] sm:$0xff]   ;;  %v701_v18 = vmov 0.0   ;;  %vm283_vm4 = vcmask 523264   ;;  %vm702_vm5 = vmmov 0   ;;  %v255_v21 = vlaneseq  ;;  %s546_s8 = sshll.u32 %s685_s13, 4  ;;  %s547_s9 = sshll.u32 %s681_s12, 4 }
  0xf1   : > { %560 = vmatprep.subr.bf16.mxu0 %v701_v18  ;;  %v288_v19 = vsel %vm283_vm4, %v627_v17, 0  ;;  %562 = vmatprep.mubr.msk.bf16.mxu0 %vm702_vm5, %v701_v18  ;;  %v628_v20 = vld [vmem:[%s766_s26] sm:$0xff]   ;;  %v258_v31 = vstv %s546_s8  ;;  %v264_v32 = vstv %s547_s9  ;;  %vm349_vm10 = vcmask 130048   ;;  %s361_s10 = scalar_lea.vmem [#allocation3], %s681_s12  ;;  %p373_p11 = scmp.eq.s32.totalorder %s681_s12, 2  ;;  %v348_v56 = vld [vmem:[#allocation2 + $0x8] sm:$0xff] }
  0xf2   : > { %561 = vmatpush3.bf16.xpose.msra.mxu0 %v288_v19  ;;  %v256_v23 = vshrl.u32 %v255_v21, 7  ;;  %v781_v27 = vand.u32 127, %v255_v21  ;;  %v362_v50 = vld [vmem:[%s361_s10] sm:$0x1]  ;;  %vm371_vm12 = vcmask 122880   ;;  %vm358_vm13 = vcmask 7168  }
  0xf3   : > { %v347_v53 = vld [vmem:[#allocation2] sm:$0xff]  ;;  %p553_p12 = scmp.ne.s32.totalorder %s681_s12, 2 }
  0xf4   : > { %v257_v33 = vadd.s32 8, %v256_v23  ;;  %v259_v35 = vadd.s32 %v258_v31, %v256_v23  ;;  %v265_v36 = vadd.s32 %v264_v32, %v781_v27  ;;  %v385_v15 = vld [vmem:[#allocation4] sm:$0x1] (!%p553_p12)  ;;  %vm402_vm14 = vcmask (!%p553_p12), 0  }
  0xf6   : > { %v260_v37 = vadd.s32 %v258_v31, %v257_v33  ;;  %vm266_vm6 = vcmp.lt.s32.totalorder %v259_v35, 40  ;;  %vm268_vm7 = vcmp.lt.s32.totalorder %v265_v36, 40 }
  0xf7   : > { %vm337_vm9 = vmand %vm266_vm6, %vm268_vm7 }
  0xf8   : > { %vm267_vm8 = vcmp.lt.s32.totalorder %v260_v37, 40 }
  0xf9   : > { %563 = vmatmul.mubr.msk.bf16.vlgmr.msra.gmra.mrb[0].mxu0 %vm283_vm4, %v628_v20  ;;  %vm338_vm11 = vmand %vm267_vm8, %vm268_vm7 }
 0x1cc   : > { %v324_v22 = vpop.f32.mrb[0].mxu0 }
 0x1cd   : > { %v551_v24 = vadd.f32 -10.0, %v324_v22  ;;  %v564_v25 = vpop.f32.mrb[1].mxu0 }
 0x1ce   : > { %v327_v26 = vpop.f32.mrb[2].mxu0 }
 0x1cf   : > { %v341_v28 = vmul.f32 1.442695, %v551_v24  ;;  %v552_v29 = vadd.f32 -10.0, %v327_v26  ;;  %v565_v30 = vpop.f32.mrb[3].mxu0 }
 0x1d1   : > { %629 = vpow2.f32 %v341_v28  ;;  %v343_v34 = vmul.f32 1.442695, %v552_v29 }
 0x1d3   : > { %631 = vpow2.f32 %v343_v34 }
 0x1db   : > { %v630_v38 = vpop.eup %629 }
 0x1dc   : > { %v345_v39 = vsel %vm337_vm9, %v630_v38, 0.0 }
 0x1dd   : > { %v632_v40 = vpop.eup %631  ;;  %v350_v41 = vsel %vm349_vm10, %v345_v39, 0.0 }
 0x1de   : > { %351 = vadd.xlane.f32.xlu0 %v350_v41  ;;  %v346_v42 = vsel %vm338_vm11, %v632_v40, 0.0 }
 0x1df   : > { %v353_v43 = vsel %vm349_vm10, %v346_v42, 0.0 }
 0x1e0   : > { %v363_v44 = vadd.f32 %v353_v43, %v350_v41 }
 0x1e2   : > { %354 = vadd.xlane.f32.xlu0 %v353_v43  ;;  %v364_v45 = vrot.slane %v363_v44, 4 }
 0x1e4   : > { %v365_v46 = vadd.f32 %v364_v45, %v363_v44 }
 0x1e6   : > { %v366_v47 = vrot.slane %v365_v46, 2 }
 0x1e8   : > { %v367_v48 = vadd.f32 %v366_v47, %v365_v46 }
 0x1ea   : > { %v368_v49 = vrot.slane %v367_v48, 1 }
 0x1ec   : > { %v369_v51 = vadd.f32 %v368_v49, %v367_v48 }
 0x1ee   : > { %v370_v52 = vadd.f32 %v369_v51, %v362_v50 }
 0x1f0   : > { %372 = vst.msk [vmem:[%s361_s10] sm:$0x1] %vm371_vm12, %v370_v52 }
 0x26b   : > { %v352_v54 = vpop.xlane.xlu0 %351 }
 0x26c   : > { %v356_v55 = vadd.f32 %v352_v54, %v347_v53  ;;  %376 = sbr.rel (%p553_p12) target bundleno = 861 (0x35d), region = 44 }
 0x26e   : > { %359 = vst.msk [vmem:[#allocation2] sm:$0xff] %vm358_vm13, %v356_v55 }
 0x26f   : > { %v355_v57 = vpop.xlane.xlu0 %354 }
 0x270   : > { %v357_v58 = vadd.f32 %v355_v57, %v348_v56 }
 0x272   : > { %360 = vst.msk [vmem:[#allocation2 + $0x8] sm:$0xff] %vm358_vm13, %v357_v58 }
 0x275   : > { %v377_v59 = vld [vmem:[#allocation2] sm:$0xff] }
 0x276   : > { %633 = vlog2.f32 %v377_v59 }
 0x279   : > { %v378_v60 = vld [vmem:[#allocation2 + $0x8] sm:$0xff] }
 0x27a   : > { %635 = vlog2.f32 %v378_v60 }
 0x280   : > { %v634_v61 = vpop.eup %633 }
 0x281   : > { %v380_v63 = vmul.f32 0.6931472, %v634_v61 }
 0x283   : > { %v383_v1 = vadd.f32 10.0, %v380_v63 }
 0x284   : > { %v636_v62 = vpop.eup %635 }
 0x285   : > { %v382_v0 = vmul.f32 0.6931472, %v636_v62  ;;  %v386_v3 = vsel %vm266_vm6, %v383_v1, 0.0 }
 0x286   : > { %v388_v5 = vsel %vm358_vm13, %v386_v3, 0.0 }
 0x287   : > { %v384_v2 = vadd.f32 10.0, %v382_v0 }
 0x289   : > { %v387_v4 = vsel %vm267_vm8, %v384_v2, 0.0 }
 0x28a   : > { %v389_v6 = vsel %vm358_vm13, %v387_v4, 0.0 }
 0x28b   : > { %v390_v7 = vadd.f32 %v389_v6, %v388_v5 }
 0x28d   : > { %391 = vadd.xlane.f32.xlu0 %v390_v7 }
 0x31a   : > { %v392_v8 = vpop.xlane.xlu0 %391 }
 0x31b   : > { %v393_v9 = vrot.slane %v392_v8, 4 }
 0x31d   : > { %v394_v10 = vadd.f32 %v393_v9, %v392_v8 }
 0x31f   : > { %v395_v11 = vrot.slane %v394_v10, 2 }
 0x321   : > { %v396_v12 = vadd.f32 %v395_v11, %v394_v10 }
 0x323   : > { %v397_v13 = vrot.slane %v396_v12, 1 }
 0x325   : > { %v398_v14 = vadd.f32 %v397_v13, %v396_v12 }
 0x327   : > { %568 = vpush %v398_v14 }
 0x358   : > { %s569_s11 = spop %568 }
 0x359   : > { %v400_v16 = vstv %s569_s11 }
 0x35a   : > { %v401_v17 = vadd.f32 %v400_v16, %v385_v15 }
 0x35c   : > { %403 = vst.msk [vmem:[#allocation4] sm:$0x1] %vm402_vm14, %v401_v17 }
 0x35d PF: > { %p404_p13 = scmp.eq.s32.totalorder %s685_s13, 2 }
 0x35f   : > { %p405_p0 = pnand %p404_p13, %p373_p11 }
 0x360   : > { %v414_v18 = vld [vmem:[#allocation3] sm:$0x1] (!%p405_p0)  ;;  %v415_v19 = vld [vmem:[#allocation3 + $0x1] sm:$0x1] (!%p405_p0)  ;;  %v416_v20 = vld [vmem:[#allocation3 + $0x2] sm:$0x1] (!%p405_p0) }
 0x361   : > { %408 = sbr.rel (%p405_p0) target bundleno = 1100 (0x44c), region = 48  ;;  %637 = vlog2.f32 (!%p405_p0), %v414_v18  ;;  %v409_v21 = vadd.s32 (!%p405_p0), 16, %v781_v27  ;;  %v410_v23 = vadd.s32 (!%p405_p0), 32, %v781_v27  ;;  %vm411_vm15 = vcmp.lt.s32.totalorder (!%p405_p0), %v781_v27, 40  ;;  %v446_v48 = vld [vmem:[#allocation5] sm:$0x1] (!%p405_p0) }
 0x362   : > { %639 = vlog2.f32 (!%p405_p0), %v415_v19 }
 0x363   : > { %641 = vlog2.f32 (!%p405_p0), %v416_v20  ;;  %vm412_vm0 = vcmp.lt.s32.totalorder (!%p405_p0), %v409_v21, 40  ;;  %vm413_vm1 = vcmp.lt.s32.totalorder (!%p405_p0), %v410_v23, 40  ;;  %v443_v47 = vld [vmem:[#allocation4] sm:$0x1] (!%p405_p0) }
 0x36b   : > { %v638_v22 = vpop.eup %637 }
 0x36c   : > { %v640_v24 = vpop.eup %639  ;;  %v418_v25 = vmul.f32 0.6931472, %v638_v22 }
 0x36d   : > { %v642_v26 = vpop.eup %641  ;;  %v420_v28 = vmul.f32 0.6931472, %v640_v24 }
 0x36e   : > { %v422_v29 = vmul.f32 0.6931472, %v642_v26  ;;  %v423_v30 = vadd.f32 10.0, %v418_v25 }
 0x36f   : > { %v424_v31 = vadd.f32 10.0, %v420_v28 }
 0x370   : > { %v425_v32 = vadd.f32 10.0, %v422_v29  ;;  %v426_v33 = vsel %vm411_vm15, %v423_v30, 0.0 }
 0x371   : > { %v427_v34 = vsel %vm412_vm0, %v424_v31, 0.0  ;;  %v429_v35 = vsel %vm371_vm12, %v426_v33, 0.0 }
 0x372   : > { %v428_v36 = vsel %vm413_vm1, %v425_v32, 0.0  ;;  %v430_v37 = vsel %vm371_vm12, %v427_v34, 0.0 }
 0x373   : > { %v431_v38 = vadd.f32 %v430_v37, %v429_v35  ;;  %v432_v39 = vsel %vm371_vm12, %v428_v36, 0.0 }
 0x375   : > { %v433_v40 = vadd.f32 %v432_v39, %v431_v38 }
 0x377   : > { %434 = vadd.xlane.f32.xlu0 %v433_v40 }
 0x404   : > { %v435_v27 = vpop.xlane.xlu0 %434 }
 0x405   : > { %v436_v41 = vrot.slane %v435_v27, 4 }
 0x407   : > { %v437_v42 = vadd.f32 %v436_v41, %v435_v27 }
 0x409   : > { %v438_v43 = vrot.slane %v437_v42, 2 }
 0x40b   : > { %v439_v44 = vadd.f32 %v438_v43, %v437_v42 }
 0x40d   : > { %v440_v45 = vrot.slane %v439_v44, 1 }
 0x40f   : > { %v441_v46 = vadd.f32 %v440_v45, %v439_v44 }
 0x411   : > { %570 = vpush %v441_v46 }
 0x412   : > { %572 = vpush %v443_v47 }
 0x413   : > { %574 = vpush %v446_v48 }
 0x442   : > { %s571_s12 = spop %570 }
 0x443   : > { %s573_s13 = spop %572 }
 0x444   : > { %s445_s20 = sadd.f32 %s573_s13, %s571_s12  ;;  %s575_s21 = spop %574 }
 0x445   : > { %s448_s22 = smul.f32 2.0, %s575_s21 }
 0x447   : > { %s449_s23 = ssub.f32 %s445_s20, %s448_s22 }
 0x449   : > { %s450_s24 = smul.f32 0.0125, %s449_s23 }
 0x44b   : > { %452 = sst [smem:[#allocation6]] %s450_s24 }
 0x44c PF: > { %p580_p1 = scmp.eq.s32.totalorder %s535_s17, 8  ;;  %s643_s27 = scalar_lea.hbm %s837_s3, 16 }
 0x44d   : > { %p644_p2 = scmp.ne.s32.totalorder %s837_s3, %s643_s27  ;;  %p649_p5 = scmp.lt.u32.totalorder %s643_s27, %s837_s3 }
 0x44f   : > { %p645_p3 = pnand %p644_p2, %p580_p1 }
 0x451   : > { %p646_p4 = pneg %p645_p3 }
 0x453   : > { %p651_p6 = pnand %p649_p5, %p646_p4 }
 0x455   : > { %654 = shalt.err (!%p651_p6)
}
 0x456   : > { %s703_s5 = smov [#allocation6]  }
 0x457   : > { %577 = dma.smem_to_hbm (%p580_p1), %s703_s5, 16, %s837_s3, [#allocation7]  }
 0x458   : > { %676 = dma.done.wait (%p580_p1), [#allocation7], 16  }
 0x459   : > { %678 = vsyncadd (%p580_p1), [#allocation7], 4294967280 }
 0x45a   : > { %466 = sfence }
 0x45b PF: > { %s14_s16 = sadd.s32 1, %s697_s16   ;;  %s838_s12 = smov %s689_s14 }
 0x45c   : > { %p11_p7 = scmp.ge.s32.totalorder %s14_s16, 11   ;;  %s839_s13 = smov %s693_s15 }
 0x45d   : > { %s840_s14 = smov %s843_s18  ;;  %s841_s15 = smov %s847_s19 }
 0x45e   :  { %13 = sbr.rel (!%p11_p7) target bundleno = 3 (0x3), region = 83 }
 0x465   :  { %472 = vsyncpa [#allocation7], 1 }
 0x466   :  { %474 = vsyncpa [#allocation7 + $0x1], 1 }

// kernel: contrastive_loss_pallas.2
= control target key start
LH: loop header
LB: loop body
LE: loop exit
PB: predicated region body
PF: predicated region fallthrough
CT: control target
= control target key end

     0   :  { %s1327_s21 = smov 0   ;;  %s1462_s0 = inlined_call_operand.vmem [shape: f32[48,32], index: 0, kind: input, shape index: {}]   ;;  %s1463_s1 = inlined_call_operand.vmem [shape: f32[48,16], index: 1, kind: input, shape index: {}]   ;;  %s1464_s2 = inlined_call_operand.vmem [shape: f32[32,64], index: 2, kind: input, shape index: {}]   ;;  %s1465_s3 = inlined_call_operand.vmem [shape: f32[1,64], index: 3, kind: input, shape index: {}]   ;;  %s1466_s4 = inlined_call_operand.vmem [shape: f32[64,64], index: 4, kind: input, shape index: {}]   ;;  %s1467_s5 = inlined_call_operand.vmem [shape: f32[1,64], index: 5, kind: input, shape index: {}]   ;;  %s1468_s6 = inlined_call_operand.vmem [shape: f32[16,64], index: 6, kind: input, shape index: {}]   ;;  %s1469_s7 = inlined_call_operand.vmem [shape: f32[1,64], index: 7, kind: input, shape index: {}]   ;;  %s1470_s8 = inlined_call_operand.vmem [shape: f32[64,64], index: 8, kind: input, shape index: {}]   ;;  %s1471_s9 = inlined_call_operand.vmem [shape: f32[1,64], index: 9, kind: input, shape index: {}]   ;;  %s1472_s10 = inlined_call_operand.vmem [shape: bf16[48,64], index: 10, kind: output, shape index: {0}]   ;;  %s1473_s11 = inlined_call_operand.vmem [shape: bf16[48,64], index: 11, kind: output, shape index: {1}]   ;;  %s1474_s12 = inlined_call_operand.vmem [shape: f32[48,1], index: 12, kind: output, shape index: {2}]  }
   0x1 LB: > { %s1066_s22 = sadd.s32 4294967295, %s1259_s21   ;;  %p1070_p0 = scmp.ge.s32.totalorder %s1259_s21, 1  ;;  %s1259_s21 = sphi %s1327_s21, %s23_s21  }
   0x2   : > { %p379_p1 = scmp.lt.s32.totalorder %s1259_s21, 4 }
   0x4   : > { %p380_p2 = pnand %p1070_p0, %p379_p1 }
   0x5   : > { %v468_v0 = vld [vmem:[%s1464_s2] sm:$0xff] (!%p380_p2)  ;;  %v469_v1 = vld [vmem:[%s1464_s2 + $0x8] sm:$0xff] (!%p380_p2)  ;;  %s1071_s29 = sshll.u32 (!%p380_p2), %s1066_s22, 1  ;;  %v470_v5 = vld [vmem:[%s1464_s2 + $0x10] sm:$0xff] (!%p380_p2)  ;;  %vm671_vm0 = vcmask (!%p380_p2), 130048   ;;  %vm479_vm1 = vcmask (!%p380_p2), 261120  }
   0x6   : > { %383 = sbr.rel (%p380_p2) target bundleno = 766 (0x2fe), region = 60  ;;  %v662_v2 = vld [vmem:[%s1468_s6] sm:$0xff] (!%p380_p2)  ;;  %v1192_v3 = vpack.c.bf16 (!%p380_p2), %v469_v1, %v468_v0  ;;  %v663_v4 = vld [vmem:[%s1468_s6 + $0x8] sm:$0xff] (!%p380_p2)  ;;  %v471_v6 = vld [vmem:[%s1464_s2 + $0x18] sm:$0xff] (!%p380_p2)  ;;  %p437_p3 = scmp.lt.s32.totalorder (!%p380_p2), %s1071_s29, 5  ;;  %vm578_vm2 = vcmask (!%p380_p2), 523264  }
   0x7   : > { %v1216_v7 = vpack.c.bf16 (!%p380_p2), %v663_v4, %v662_v2  ;;  %v1196_v8 = vpack.c.bf16 (!%p380_p2), %v471_v6, %v470_v5  ;;  %v755_v9 = vld [vmem:[%s1470_s8] sm:$0xff] (!%p380_p2)  ;;  %v756_v10 = vld [vmem:[%s1470_s8 + $0x8] sm:$0xff] (!%p380_p2)  ;;  %v757_v14 = vld [vmem:[%s1470_s8 + $0x10] sm:$0xff] (!%p380_p2)  ;;  %v882_v5 = vlaneseq (!%p380_p2)  ;;  %s1093_s24 = sshll.u32 (!%p380_p2), %s1066_s22, 4  ;;  %vm917_vm5 = vcmask (!%p380_p2), 519168  }
   0x8   : > { %1193 = vmatprep.subr.bf16.mxu1 (!%p380_p2), %v1192_v3  ;;  %v1220_v11 = vpack.c.bf16 (!%p380_p2), %v756_v10, %v755_v9  ;;  %v563_v12 = vld [vmem:[%s1466_s4] sm:$0xff] (!%p380_p2)  ;;  %v564_v13 = vld [vmem:[%s1466_s4 + $0x8] sm:$0xff] (!%p380_p2)  ;;  %v758_v15 = vld [vmem:[%s1470_s8 + $0x18] sm:$0xff] (!%p380_p2)  ;;  %vm906_vm6 = vcmask (!%p380_p2), 7168  }
   0x9   : > { %1195 = vmatpush3.bf16.msra.mxu1 (!%p380_p2), %v1192_v3  ;;  %1217 = vmatprep.subr.bf16.mxu0 (!%p380_p2), %v1216_v7  ;;  %v1200_v16 = vpack.c.bf16 (!%p380_p2), %v564_v13, %v563_v12  ;;  %v565_v17 = vld [vmem:[%s1466_s4 + $0x10] sm:$0xff] (!%p380_p2)  ;;  %v566_v18 = vld [vmem:[%s1466_s4 + $0x18] sm:$0xff] (!%p380_p2)  ;;  %v1224_v21 = vpack.c.bf16 (!%p380_p2), %v758_v15, %v757_v14  ;;  %v759_v22 = vld [vmem:[%s1470_s8 + $0x20] sm:$0xff] (!%p380_p2)  ;;  %v883_v9 = vshrl.u32 (!%p380_p2), %v882_v5, 7 }
   0xa   : > { %1219 = vmatpush3.bf16.msra.mxu0 (!%p380_p2), %v1216_v7  ;;  %1197 = vmatprep.subr.bf16.mxu1 (!%p380_p2), %v1196_v8  ;;  %v760_v25 = vld [vmem:[%s1470_s8 + $0x28] sm:$0xff] (!%p380_p2)  ;;  %v1204_v26 = vpack.c.bf16 (!%p380_p2), %v566_v18, %v565_v17  ;;  %v567_v28 = vld [vmem:[%s1466_s4 + $0x20] sm:$0xff] (!%p380_p2)  ;;  %v761_v31 = vld [vmem:[%s1470_s8 + $0x30] sm:$0xff] (!%p380_p2) }
   0xb   : > { %1221 = vmatprep.subr.bf16.mxu0 (!%p380_p2), %v1220_v11  ;;  %v1228_v27 = vpack.c.bf16 (!%p380_p2), %v760_v25, %v759_v22  ;;  %v568_v29 = vld [vmem:[%s1466_s4 + $0x28] sm:$0xff] (!%p380_p2)  ;;  %v762_v32 = vld [vmem:[%s1470_s8 + $0x38] sm:$0xff] (!%p380_p2)  ;;  %v569_v34 = vld [vmem:[%s1466_s4 + $0x30] sm:$0xff] (!%p380_p2) }
   0xc   : > { %v1208_v30 = vpack.c.bf16 (!%p380_p2), %v568_v29, %v567_v28  ;;  %v1232_v33 = vpack.c.bf16 (!%p380_p2), %v762_v32, %v761_v31  ;;  %v570_v35 = vld [vmem:[%s1466_s4 + $0x38] sm:$0xff] (!%p380_p2)  ;;  %v1087_v37 = vld [vmem:[%s1469_s7] ss:$0 sm:$0xff] (!%p380_p2) }
   0xd   : > { %s1476_s29 = smov (!%p437_p3, %s1071_s29), 5  ;;  %1199 = vmatpush3.bf16.msra.mxu1 %v1196_v8  ;;  %v1212_v36 = vpack.c.bf16 %v570_v35, %v569_v34  ;;  %v1081_v39 = vld [vmem:[%s1465_s3] ss:$0 sm:$0xff] }
   0xe   : > { %s1376_s15 = sshll.u32 %s1476_s29, 3  ;;  %1201 = vmatprep.subr.bf16.mxu1 %v1200_v16  ;;  %v1090_v51 = vld [vmem:[%s1471_s9] ss:$0 sm:$0xff]  ;;  %s1076_s22 = sshll.u32 %s1476_s29, 2 }
   0xf   : > { %s446_s18 = scalar_lea.vmem %s1463_s1, %s1376_s15  ;;  %s440_s27 = scalar_lea.vmem %s1462_s0, %s1376_s15  ;;  %v1084_v54 = vld [vmem:[%s1467_s5] ss:$0 sm:$0xff] }
  0x10   : > { %v660_v19 = vld [vmem:[%s446_s18] sm:$0xff]  ;;  %v661_v20 = vld [vmem:[%s446_s18 + $0x8] sm:$0xff]  ;;  %s452_s30 = scalar_lea.vmem %s1472_s10, %s1076_s22  ;;  %s464_s16 = scalar_lea.vmem %s1474_s12, %s1376_s15 }
  0x11   : > { %1170 = vmatprep.mubr.msk.f32.mxu0 %vm671_vm0, %v660_v19  ;;  %v466_v23 = vld [vmem:[%s440_s27] sm:$0xff]  ;;  %v467_v24 = vld [vmem:[%s440_s27 + $0x8] sm:$0xff]  ;;  %s458_s27 = scalar_lea.vmem %s1473_s11, %s1076_s22 }
  0x12   : > { %1171 = vmatmul.mubr.msk.f32.vlgmr.msra.gmra.mrb[0].mxu0 %vm671_vm0, %v661_v20  ;;  %1144 = vmatprep.mubr.msk.f32.mxu1 %vm479_vm1, %v466_v23  ;;  %v1261_v20 = vmov 0.0  }
  0x13   : > { %1223 = vmatpush3.bf16.msra.mxu0 %v1220_v11  ;;  %1145 = vmatmul.mubr.msk.f32.vlgmr.msra.gmra.mrb[0].mxu1 %vm479_vm1, %v467_v24  ;;  %v885_v11 = vstv %s1093_s24 }
  0x14   : > { %1225 = vmatprep.subr.bf16.mxu0 %v1224_v21  ;;  %1203 = vmatpush3.bf16.msra.mxu1 %v1200_v16  ;;  %v886_v15 = vadd.s32 %v885_v11, %v883_v9  ;;  %v884_v16 = vadd.s32 8, %v883_v9 }
  0x15   : > { %1205 = vmatprep.subr.bf16.mxu1 %v1204_v26 }
  0x16   : > { %vm888_vm3 = vcmp.lt.s32.totalorder %v886_v15, 40  ;;  %v887_v18 = vadd.s32 %v885_v11, %v884_v16 }
  0x17   : > { %1227 = vmatpush3.bf16.msra.mxu0 %v1224_v21  ;;  %v1094_v21 = vsel %vm888_vm3, 1.0, %v1261_v20 }
  0x18   : > { %1229 = vmatprep.subr.bf16.mxu0 %v1228_v27  ;;  %1207 = vmatpush3.bf16.msra.mxu1 %v1204_v26  ;;  %vm889_vm4 = vcmp.lt.s32.totalorder %v887_v18, 40 }
  0x19   : > { %1209 = vmatprep.subr.bf16.mxu1 %v1208_v30 }
  0x1b   : > { %1231 = vmatpush3.bf16.msra.mxu0 %v1228_v27  ;;  %v1095_v27 = vsel %vm889_vm4, 1.0, %v1261_v20 }
  0x1c   : > { %1211 = vmatpush3.bf16.msra.mxu1 %v1208_v30  ;;  %1233 = vmatprep.subr.bf16.mxu0 %v1232_v33 }
  0x1d   : > { %1213 = vmatprep.subr.bf16.mxu1 %v1212_v36 }
  0x1f   : > { %1235 = vmatpush3.bf16.msra.mxu0 %v1232_v33 }
  0x20   : > { %1215 = vmatpush3.bf16.msra.mxu1 %v1212_v36 }
  0xe5   : > { %v1172_v38 = vpop.f32.mrb[0].mxu0 }
  0xe6   : > { %v750_v40 = vadd.f32 %v1172_v38, %v1087_v37  ;;  %v744_v41 = vpop.f32.mrb[1].mxu0  ;;  %v1146_v43 = vpop.f32.mrb[0].mxu1 }
  0xe7   : > { %v745_v42 = vadd.f32 %v1087_v37, %v744_v41  ;;  %v558_v45 = vadd.f32 %v1146_v43, %v1081_v39  ;;  %v552_v46 = vpop.f32.mrb[1].mxu1 }
  0xe8   : > { %v754_v44 = vmax.f32 %v750_v40, 0.0  ;;  %v553_v48 = vadd.f32 %v1081_v39, %v552_v46 }
  0xe9   : > { %v753_v47 = vmax.f32 %v745_v42, 0.0  ;;  %v562_v50 = vmax.f32 %v558_v45, 0.0 }
  0xea   : > { %v561_v49 = vmax.f32 %v553_v48, 0.0 }
  0xeb   : > { %1189 = vmatprep.mubr.msk.f32.mxu0 %vm578_vm2, %v753_v47 }
  0xec   : > { %1190 = vmatmul.mubr.msk.f32.vlgmr.msra.gmra.mrb[2].mxu0 %vm578_vm2, %v754_v44  ;;  %1163 = vmatprep.mubr.msk.f32.mxu1 %vm578_vm2, %v561_v49 }
  0xed   : > { %1164 = vmatmul.mubr.msk.f32.vlgmr.msra.gmra.mrb[2].mxu1 %vm578_vm2, %v562_v50 }
 0x1bf   : > { %v1191_v52 = vpop.f32.mrb[2].mxu0 }
 0x1c0   : > { %v842_v53 = vpop.f32.mrb[3].mxu0  ;;  %v848_v55 = vadd.f32 %v1191_v52, %v1090_v51  ;;  %v1165_v57 = vpop.f32.mrb[2].mxu1 }
 0x1c1   : > { %v843_v56 = vadd.f32 %v1090_v51, %v842_v53  ;;  %v651_v58 = vpop.f32.mrb[3].mxu1  ;;  %v657_v59 = vadd.f32 %v1165_v57, %v1084_v54 }
 0x1c2   : > { %v652_v60 = vadd.f32 %v1084_v54, %v651_v58  ;;  %v868_v0 = vmul.f32 %v848_v55, %v848_v55 }
 0x1c3   : > { %v867_v61 = vmul.f32 %v843_v56, %v843_v56  ;;  %v852_v2 = vmul.f32 %v657_v59, %v657_v59 }
 0x1c4   : > { %v851_v63 = vmul.f32 %v652_v60, %v652_v60  ;;  %v872_v3 = vsel %vm578_vm2, %v868_v0, 0.0 }
 0x1c5   : > { %v869_v62 = vsel %vm578_vm2, %v867_v61, 0.0  ;;  %v856_v4 = vsel %vm578_vm2, %v852_v2, 0.0 }
 0x1c6   : > { %870 = vadd.xlane.f32.xlu1 %v869_v62  ;;  %v853_v1 = vsel %vm578_vm2, %v851_v63, 0.0 }
 0x1c7   : > { %854 = vadd.xlane.f32.xlu0 %v853_v1 }
 0x1ca   : > { %873 = vadd.xlane.f32.xlu1 %v872_v3 }
 0x1cb   : > { %857 = vadd.xlane.f32.xlu0 %v856_v4 }
 0x253   : > { %v871_v6 = vpop.xlane.xlu1 %870 }
 0x254   : > { %v875_v7 = vmax.f32 %v871_v6, 1e-24  ;;  %v855_v8 = vpop.xlane.xlu0 %854 }
 0x255   : > { %v859_v10 = vmax.f32 %v855_v8, 1e-24 }
 0x256   : > { %1245 = vrsqrt.f32 %v875_v7 }
 0x257   : > { %v874_v12 = vpop.xlane.xlu1 %873  ;;  %1247 = vrsqrt.f32 %v859_v10 }
 0x258   : > { %v876_v13 = vmax.f32 %v874_v12, 1e-24  ;;  %v858_v14 = vpop.xlane.xlu0 %857 }
 0x259   : > { %v860_v17 = vmax.f32 %v858_v14, 1e-24 }
 0x25a   : > { %1249 = vrsqrt.f32 %v876_v13 }
 0x25b   : > { %1251 = vrsqrt.f32 %v860_v17 }
 0x260   : > { %v1246_v19 = vpop.eup %1245 }
 0x261   : > { %v879_v22 = vmul.f32 %v1246_v19, %v843_v56  ;;  %v1248_v23 = vpop.eup %1247 }
 0x262   : > { %v863_v24 = vmul.f32 10.0, %v1248_v23 }
 0x263   : > { %v896_v25 = vmul.f32 %v1094_v21, %v879_v22 }
 0x264   : > { %v1250_v26 = vpop.eup %1249  ;;  %v865_v28 = vmul.f32 %v863_v24, %v652_v60 }
 0x265   : > { %v1104_v29 = vpack.c.bf16 %v896_v25, %v896_v25  ;;  %v880_v30 = vmul.f32 %v1250_v26, %v848_v55  ;;  %v1252_v31 = vpop.eup %1251 }
 0x266   : > { %v864_v32 = vmul.f32 10.0, %v1252_v31  ;;  %v894_v33 = vmul.f32 %v1094_v21, %v865_v28 }
 0x267   : > { %928 = vst.msk [vmem:[%s458_s27] sm:$0xf] %vm917_vm5, %v1104_v29  ;;  %v897_v34 = vmul.f32 %v1095_v27, %v880_v30 }
 0x268   : > { %v866_v35 = vmul.f32 %v864_v32, %v657_v59  ;;  %v898_v36 = vmul.f32 %v896_v25, %v894_v33  ;;  %v1102_v37 = vpack.c.bf16 %v894_v33, %v894_v33 }
 0x269   : > { %v1105_v38 = vpack.c.bf16 %v897_v34, %v897_v34 }
 0x26a   : > { %v900_v39 = vsel %vm578_vm2, %v898_v36, 0.0  ;;  %918 = vst.msk [vmem:[%s452_s30] sm:$0xf] %vm917_vm5, %v1102_v37  ;;  %v895_v40 = vmul.f32 %v1095_v27, %v866_v35 }
 0x26b   : > { %929 = vst.msk [vmem:[%s458_s27 + $0x4] sm:$0xf] %vm917_vm5, %v1105_v38  ;;  %901 = vadd.xlane.f32.xlu0 %v900_v39 }
 0x26c   : > { %v899_v41 = vmul.f32 %v897_v34, %v895_v40  ;;  %v1103_v42 = vpack.c.bf16 %v895_v40, %v895_v40 }
 0x26e   : > { %v903_v43 = vsel %vm578_vm2, %v899_v41, 0.0  ;;  %919 = vst.msk [vmem:[%s452_s30 + $0x4] sm:$0xf] %vm917_vm5, %v1103_v42 }
 0x26f   : > { %904 = vadd.xlane.f32.xlu1 %v903_v43 }
 0x2f8   : > { %v902_v44 = vpop.xlane.xlu0 %901 }
 0x2f9   : > { %907 = vst.msk [vmem:[%s464_s16] sm:$0xff] %vm906_vm6, %v902_v44 }
 0x2fc   : > { %v905_v45 = vpop.xlane.xlu1 %904 }
 0x2fd   : > { %908 = vst.msk [vmem:[%s464_s16 + $0x8] sm:$0xff] %vm906_vm6, %v905_v45 }
 0x2fe PF: > { %s23_s21 = sadd.s32 1, %s1259_s21  }
 0x2ff   : > { %p20_p4 = scmp.ge.s32.totalorder %s23_s21, 5  }
 0x301   :  { %22 = sbr.rel (!%p20_p4) target bundleno = 1 (0x1), region = 117 }

</bundles_post_ra>
